<compile_context>
chip_gen: v7x
topology: tpu7x:2x2x1
jax: 0.10.0
libtpu: 0.0.40
codegen_flags: <defaults>
</compile_context>

<pallas_src>
import functools
import math

import jax
import jax.numpy as jnp
import numpy as np
from jax import lax
from jax.experimental import pallas as pl
from jax.experimental.pallas import tpu as pltpu


# ----------------------------------------------------------------------------
# Fused kernel: per-batch tile does QKV projection, per-head attention and the
# output projection, all in VMEM.
# ----------------------------------------------------------------------------
def _mha_fused_kernel(q_ref, k_ref, v_ref, wqT_ref, wkT_ref, wvT_ref,
                      woutT_ref, bout_ref, o_ref, *, n_heads, head_dim):
    q = q_ref[0]  # (Sq, E)
    k = k_ref[0]  # (Sk, E)
    v = v_ref[0]  # (Sk, E)

    # Block-diagonal per-head projections as single lane-dense matmuls:
    # x @ kron(I_H, W^T)  ==  per-head  x_h @ W^T  written into columns h*d:(h+1)*d
    qp = jnp.dot(q, wqT_ref[...], preferred_element_type=jnp.float32)
    kp = jnp.dot(k, wkT_ref[...], preferred_element_type=jnp.float32)
    vp = jnp.dot(v, wvT_ref[...], preferred_element_type=jnp.float32)

    scale = 1.0 / math.sqrt(head_dim)
    ctx_heads = []
    for h in range(n_heads):  # static unrolled loop over heads (H is small)
        lo, hi = h * head_dim, (h + 1) * head_dim
        qh = qp[:, lo:hi]  # (Sq, d)
        kh = kp[:, lo:hi]  # (Sk, d)
        vh = vp[:, lo:hi]  # (Sk, d)

        # scores = (q @ k^T) / sqrt(d)   -- contract last dims, no transpose.
        s = lax.dot_general(qh, kh, (((1,), (1,)), ((), ())),
                            preferred_element_type=jnp.float32) * scale

        # softmax over the key axis (f32 throughout; exp/recip go to the EUP)
        m = jnp.max(s, axis=-1, keepdims=True)
        e = jnp.exp(s - m)
        inv = pl.reciprocal(jnp.sum(e, axis=-1, keepdims=True))
        p = e * inv

        ctx_heads.append(jnp.dot(p, vh, preferred_element_type=jnp.float32))

    concat = jnp.concatenate(ctx_heads, axis=-1)  # (Sq, E)

    # Output projection: y = concat @ Wout^T + bout  (Wout pre-transposed host-side)
    y = jnp.dot(concat, woutT_ref[...], preferred_element_type=jnp.float32)
    y = y + bout_ref[...]
    o_ref[0] = y.astype(o_ref.dtype)


# ----------------------------------------------------------------------------
# Wrapper (jitted so weight prep + pallas_call compile as one executable)
# ----------------------------------------------------------------------------
@functools.partial(jax.jit, static_argnames=("n_heads",))
def multi_head_attention(key_in, query_in, value_in, params, n_heads):
    B, Sk, E = key_in.shape
    Sq = query_in.shape[1]
    d = E // n_heads

    # Tiny one-time weight prep: block-diagonal lift + pre-transpose.
    eye = jnp.eye(n_heads, dtype=jnp.float32)
    wqT_big = jnp.kron(eye, params["wq"].T)   # (E, E)
    wkT_big = jnp.kron(eye, params["wk"].T)   # (E, E)
    wvT_big = jnp.kron(eye, params["wv"].T)   # (E, E)
    woutT = params["wout"].T                  # (E, E)
    bout = params["bout"]                     # (1, E)

    kernel = functools.partial(_mha_fused_kernel, n_heads=n_heads, head_dim=d)

    out = pl.pallas_call(
        kernel,
        grid=(B,),
        in_specs=[
            pl.BlockSpec((1, Sq, E), lambda b: (b, 0, 0)),   # query
            pl.BlockSpec((1, Sk, E), lambda b: (b, 0, 0)),   # key
            pl.BlockSpec((1, Sk, E), lambda b: (b, 0, 0)),   # value
            pl.BlockSpec((E, E), lambda b: (0, 0)),          # Wq^T block-diag
            pl.BlockSpec((E, E), lambda b: (0, 0)),          # Wk^T block-diag
            pl.BlockSpec((E, E), lambda b: (0, 0)),          # Wv^T block-diag
            pl.BlockSpec((E, E), lambda b: (0, 0)),          # Wout^T
            pl.BlockSpec((1, E), lambda b: (0, 0)),          # bias
        ],
        out_specs=pl.BlockSpec((1, Sq, E), lambda b: (b, 0, 0)),
        out_shape=jax.ShapeDtypeStruct((B, Sq, E), jnp.float32),
        compiler_params=pltpu.CompilerParams(
            dimension_semantics=("parallel",)),
    )(query_in, key_in, value_in, wqT_big, wkT_big, wvT_big, woutT, bout)
    return out


# ----------------------------------------------------------------------------
# Pure-JAX reference (mirrors the PyTorch forward, mask=None path)
# ----------------------------------------------------------------------------
def _reference(key_in, query_in, value_in, params, n_heads):
    B, Sk, E = key_in.shape
    Sq = query_in.shape[1]
    d = E // n_heads
    kh = key_in.reshape(B, Sk, n_heads, d)
    qh = query_in.reshape(B, Sq, n_heads, d)
    vh = value_in.reshape(B, Sk, n_heads, d)
    kp = jnp.einsum("bshd,ed->bshe", kh, params["wk"]).transpose(0, 2, 1, 3)
    qp = jnp.einsum("bshd,ed->bshe", qh, params["wq"]).transpose(0, 2, 1, 3)
    vp = jnp.einsum("bshd,ed->bshe", vh, params["wv"]).transpose(0, 2, 1, 3)
    prod = jnp.einsum("bhqd,bhkd->bhqk", qp, kp) / math.sqrt(d)
    scores = jax.nn.softmax(prod, axis=-1)
    ctx = jnp.einsum("bhqk,bhkd->bhqd", scores, vp)
    concat = ctx.transpose(0, 2, 1, 3).reshape(B, Sq, E)
    return concat @ params["wout"].T + params["bout"][0]


if __name__ == "__main__":
    # Small, module-consistent shapes: embed_dim=32, n_heads=4 -> head_dim=8
    B, S, E, H = 2, 8, 32, 4
    d = E // H

    root = jax.random.PRNGKey(0)
    kk, kq, kv, kw1, kw2, kw3, kw4, kb = jax.random.split(root, 8)

    key_in = jax.random.normal(kk, (B, S, E), dtype=jnp.float32)
    query_in = jax.random.normal(kq, (B, S, E), dtype=jnp.float32)
    value_in = jax.random.normal(kv, (B, S, E), dtype=jnp.float32)

    # Deterministic parameter init (PyTorch Linear-style uniform bounds)
    lim_d = 1.0 / math.sqrt(d)
    lim_e = 1.0 / math.sqrt(E)
    params = {
        "wq": jax.random.uniform(kw1, (d, d), jnp.float32, -lim_d, lim_d),
        "wk": jax.random.uniform(kw2, (d, d), jnp.float32, -lim_d, lim_d),
        "wv": jax.random.uniform(kw3, (d, d), jnp.float32, -lim_d, lim_d),
        "wout": jax.random.uniform(kw4, (E, E), jnp.float32, -lim_e, lim_e),
        "bout": jax.random.uniform(kb, (1, E), jnp.float32, -lim_e, lim_e),
    }

    out = multi_head_attention(key_in, query_in, value_in, params, H)
    out = jax.block_until_ready(out)

    ref = _reference(key_in, query_in, value_in, params, H)
    np.testing.assert_allclose(np.asarray(out), np.asarray(ref), rtol=1e-5, atol=1e-5)
    assert out.shape == (B, S, E)

    print("KERNEL_OK")
</pallas_src>

<mosaic_0001>
module attributes {stable_mosaic.version = 11 : i64} {
  func.func @_mha_fused_kernel(%arg0: i32, %arg1: memref<1x8x32xf32, #tpu.memory_space<vmem>>, %arg2: memref<1x8x32xf32, #tpu.memory_space<vmem>>, %arg3: memref<1x8x32xf32, #tpu.memory_space<vmem>>, %arg4: memref<32x32xf32, #tpu.memory_space<vmem>>, %arg5: memref<32x32xf32, #tpu.memory_space<vmem>>, %arg6: memref<32x32xf32, #tpu.memory_space<vmem>>, %arg7: memref<32x32xf32, #tpu.memory_space<vmem>>, %arg8: memref<1x32xf32, #tpu.memory_space<vmem>>, %arg9: memref<1x8x32xf32, #tpu.memory_space<vmem>>) attributes {dimension_semantics = [#tpu.dimension_semantics<parallel>], iteration_bounds = array<i64: 2>, scalar_prefetch = 0 : i64, scratch_operands = 0 : i64, tpu.core_type = #tpu.core_type<tc>, window_params = [{transform_indices = @transform_0, window_bounds = array<i64: 1, 8, 32>}, {transform_indices = @transform_1, window_bounds = array<i64: 1, 8, 32>}, {transform_indices = @transform_2, window_bounds = array<i64: 1, 8, 32>}, {pipeline_mode = #tpu.pipeline_mode<synchronous>, transform_indices = @transform_3, window_bounds = array<i64: 32, 32>}, {pipeline_mode = #tpu.pipeline_mode<synchronous>, transform_indices = @transform_4, window_bounds = array<i64: 32, 32>}, {pipeline_mode = #tpu.pipeline_mode<synchronous>, transform_indices = @transform_5, window_bounds = array<i64: 32, 32>}, {pipeline_mode = #tpu.pipeline_mode<synchronous>, transform_indices = @transform_6, window_bounds = array<i64: 32, 32>}, {pipeline_mode = #tpu.pipeline_mode<synchronous>, transform_indices = @transform_7, window_bounds = array<i64: 1, 32>}, {transform_indices = @transform_8, window_bounds = array<i64: 1, 8, 32>}]} {
    %c0 = arith.constant 0 : index
    %c0_0 = arith.constant 0 : index
    %c0_1 = arith.constant 0 : index
    %0 = vector.load %arg1[%c0, %c0_0, %c0_1] : memref<1x8x32xf32, #tpu.memory_space<vmem>>, vector<1x8x32xf32>
    %1 = vector.shape_cast %0 : vector<1x8x32xf32> to vector<8x32xf32>
    %c0_2 = arith.constant 0 : index
    %c0_3 = arith.constant 0 : index
    %c0_4 = arith.constant 0 : index
    %2 = vector.load %arg2[%c0_2, %c0_3, %c0_4] : memref<1x8x32xf32, #tpu.memory_space<vmem>>, vector<1x8x32xf32>
    %3 = vector.shape_cast %2 : vector<1x8x32xf32> to vector<8x32xf32>
    %c0_5 = arith.constant 0 : index
    %c0_6 = arith.constant 0 : index
    %c0_7 = arith.constant 0 : index
    %4 = vector.load %arg3[%c0_5, %c0_6, %c0_7] : memref<1x8x32xf32, #tpu.memory_space<vmem>>, vector<1x8x32xf32>
    %5 = vector.shape_cast %4 : vector<1x8x32xf32> to vector<8x32xf32>
    %c0_8 = arith.constant 0 : index
    %c0_9 = arith.constant 0 : index
    %6 = vector.load %arg4[%c0_8, %c0_9] : memref<32x32xf32, #tpu.memory_space<vmem>>, vector<32x32xf32>
    %cst = arith.constant dense<0.000000e+00> : vector<8x32xf32>
    %7 = tpu.matmul %1, %6, %cst {dimension_numbers = #tpu.dot_dimension_numbers<[1], [0], [0], [1], [0, 0, 1, 1], [], []>} : vector<8x32xf32>, vector<32x32xf32>, vector<8x32xf32> -> vector<8x32xf32>
    %c0_10 = arith.constant 0 : index
    %c0_11 = arith.constant 0 : index
    %8 = vector.load %arg5[%c0_10, %c0_11] : memref<32x32xf32, #tpu.memory_space<vmem>>, vector<32x32xf32>
    %cst_12 = arith.constant dense<0.000000e+00> : vector<8x32xf32>
    %9 = tpu.matmul %3, %8, %cst_12 {dimension_numbers = #tpu.dot_dimension_numbers<[1], [0], [0], [1], [0, 0, 1, 1], [], []>} : vector<8x32xf32>, vector<32x32xf32>, vector<8x32xf32> -> vector<8x32xf32>
    %c0_13 = arith.constant 0 : index
    %c0_14 = arith.constant 0 : index
    %10 = vector.load %arg6[%c0_13, %c0_14] : memref<32x32xf32, #tpu.memory_space<vmem>>, vector<32x32xf32>
    %cst_15 = arith.constant dense<0.000000e+00> : vector<8x32xf32>
    %11 = tpu.matmul %5, %10, %cst_15 {dimension_numbers = #tpu.dot_dimension_numbers<[1], [0], [0], [1], [0, 0, 1, 1], [], []>} : vector<8x32xf32>, vector<32x32xf32>, vector<8x32xf32> -> vector<8x32xf32>
    %12 = vector.extract_strided_slice %7 {offsets = [0, 0], sizes = [8, 8], strides = [1, 1]} : vector<8x32xf32> to vector<8x8xf32>
    %13 = vector.extract_strided_slice %9 {offsets = [0, 0], sizes = [8, 8], strides = [1, 1]} : vector<8x32xf32> to vector<8x8xf32>
    %14 = vector.extract_strided_slice %11 {offsets = [0, 0], sizes = [8, 8], strides = [1, 1]} : vector<8x32xf32> to vector<8x8xf32>
    %cst_16 = arith.constant dense<0.000000e+00> : vector<8x8xf32>
    %15 = tpu.matmul %12, %13, %cst_16 {dimension_numbers = #tpu.dot_dimension_numbers<[1], [1], [0], [0], [0, 0, 1, 0], [], []>} : vector<8x8xf32>, vector<8x8xf32>, vector<8x8xf32> -> vector<8x8xf32>
    %cst_17 = arith.constant 0.353553385 : f32
    %16 = vector.broadcast %cst_17 : f32 to vector<8x8xf32>
    %17 = arith.mulf %15, %16 : vector<8x8xf32>
    %cst_18 = arith.constant dense<0xFF800000> : vector<8xf32>
    %18 = vector.multi_reduction <maximumf>, %17, %cst_18 [1] : vector<8x8xf32> to vector<8xf32>
    %19 = vector.shape_cast %18 : vector<8xf32> to vector<8x1xf32>
    %20 = vector.broadcast %19 : vector<8x1xf32> to vector<8x8xf32>
    %21 = arith.subf %17, %20 : vector<8x8xf32>
    %22 = math.exp %21 : vector<8x8xf32>
    %cst_19 = arith.constant dense<0.000000e+00> : vector<8xf32>
    %23 = vector.multi_reduction <add>, %22, %cst_19 [1] : vector<8x8xf32> to vector<8xf32>
    %24 = vector.shape_cast %23 : vector<8xf32> to vector<8x1xf32>
    %25 = tpu.reciprocal %24 : vector<8x1xf32> -> vector<8x1xf32>
    %26 = vector.broadcast %25 : vector<8x1xf32> to vector<8x8xf32>
    %27 = arith.mulf %22, %26 : vector<8x8xf32>
    %cst_20 = arith.constant dense<0.000000e+00> : vector<8x8xf32>
    %28 = tpu.matmul %27, %14, %cst_20 {dimension_numbers = #tpu.dot_dimension_numbers<[1], [0], [0], [1], [0, 0, 1, 1], [], []>} : vector<8x8xf32>, vector<8x8xf32>, vector<8x8xf32> -> vector<8x8xf32>
    %29 = vector.extract_strided_slice %7 {offsets = [0, 8], sizes = [8, 8], strides = [1, 1]} : vector<8x32xf32> to vector<8x8xf32>
    %30 = vector.extract_strided_slice %9 {offsets = [0, 8], sizes = [8, 8], strides = [1, 1]} : vector<8x32xf32> to vector<8x8xf32>
    %31 = vector.extract_strided_slice %11 {offsets = [0, 8], sizes = [8, 8], strides = [1, 1]} : vector<8x32xf32> to vector<8x8xf32>
    %cst_21 = arith.constant dense<0.000000e+00> : vector<8x8xf32>
    %32 = tpu.matmul %29, %30, %cst_21 {dimension_numbers = #tpu.dot_dimension_numbers<[1], [1], [0], [0], [0, 0, 1, 0], [], []>} : vector<8x8xf32>, vector<8x8xf32>, vector<8x8xf32> -> vector<8x8xf32>
    %cst_22 = arith.constant 0.353553385 : f32
    %33 = vector.broadcast %cst_22 : f32 to vector<8x8xf32>
    %34 = arith.mulf %32, %33 : vector<8x8xf32>
    %cst_23 = arith.constant dense<0xFF800000> : vector<8xf32>
    %35 = vector.multi_reduction <maximumf>, %34, %cst_23 [1] : vector<8x8xf32> to vector<8xf32>
    %36 = vector.shape_cast %35 : vector<8xf32> to vector<8x1xf32>
    %37 = vector.broadcast %36 : vector<8x1xf32> to vector<8x8xf32>
    %38 = arith.subf %34, %37 : vector<8x8xf32>
    %39 = math.exp %38 : vector<8x8xf32>
    %cst_24 = arith.constant dense<0.000000e+00> : vector<8xf32>
    %40 = vector.multi_reduction <add>, %39, %cst_24 [1] : vector<8x8xf32> to vector<8xf32>
    %41 = vector.shape_cast %40 : vector<8xf32> to vector<8x1xf32>
    %42 = tpu.reciprocal %41 : vector<8x1xf32> -> vector<8x1xf32>
    %43 = vector.broadcast %42 : vector<8x1xf32> to vector<8x8xf32>
    %44 = arith.mulf %39, %43 : vector<8x8xf32>
    %cst_25 = arith.constant dense<0.000000e+00> : vector<8x8xf32>
    %45 = tpu.matmul %44, %31, %cst_25 {dimension_numbers = #tpu.dot_dimension_numbers<[1], [0], [0], [1], [0, 0, 1, 1], [], []>} : vector<8x8xf32>, vector<8x8xf32>, vector<8x8xf32> -> vector<8x8xf32>
    %46 = vector.extract_strided_slice %7 {offsets = [0, 16], sizes = [8, 8], strides = [1, 1]} : vector<8x32xf32> to vector<8x8xf32>
    %47 = vector.extract_strided_slice %9 {offsets = [0, 16], sizes = [8, 8], strides = [1, 1]} : vector<8x32xf32> to vector<8x8xf32>
    %48 = vector.extract_strided_slice %11 {offsets = [0, 16], sizes = [8, 8], strides = [1, 1]} : vector<8x32xf32> to vector<8x8xf32>
    %cst_26 = arith.constant dense<0.000000e+00> : vector<8x8xf32>
    %49 = tpu.matmul %46, %47, %cst_26 {dimension_numbers = #tpu.dot_dimension_numbers<[1], [1], [0], [0], [0, 0, 1, 0], [], []>} : vector<8x8xf32>, vector<8x8xf32>, vector<8x8xf32> -> vector<8x8xf32>
    %cst_27 = arith.constant 0.353553385 : f32
    %50 = vector.broadcast %cst_27 : f32 to vector<8x8xf32>
    %51 = arith.mulf %49, %50 : vector<8x8xf32>
    %cst_28 = arith.constant dense<0xFF800000> : vector<8xf32>
    %52 = vector.multi_reduction <maximumf>, %51, %cst_28 [1] : vector<8x8xf32> to vector<8xf32>
    %53 = vector.shape_cast %52 : vector<8xf32> to vector<8x1xf32>
    %54 = vector.broadcast %53 : vector<8x1xf32> to vector<8x8xf32>
    %55 = arith.subf %51, %54 : vector<8x8xf32>
    %56 = math.exp %55 : vector<8x8xf32>
    %cst_29 = arith.constant dense<0.000000e+00> : vector<8xf32>
    %57 = vector.multi_reduction <add>, %56, %cst_29 [1] : vector<8x8xf32> to vector<8xf32>
    %58 = vector.shape_cast %57 : vector<8xf32> to vector<8x1xf32>
    %59 = tpu.reciprocal %58 : vector<8x1xf32> -> vector<8x1xf32>
    %60 = vector.broadcast %59 : vector<8x1xf32> to vector<8x8xf32>
    %61 = arith.mulf %56, %60 : vector<8x8xf32>
    %cst_30 = arith.constant dense<0.000000e+00> : vector<8x8xf32>
    %62 = tpu.matmul %61, %48, %cst_30 {dimension_numbers = #tpu.dot_dimension_numbers<[1], [0], [0], [1], [0, 0, 1, 1], [], []>} : vector<8x8xf32>, vector<8x8xf32>, vector<8x8xf32> -> vector<8x8xf32>
    %63 = vector.extract_strided_slice %7 {offsets = [0, 24], sizes = [8, 8], strides = [1, 1]} : vector<8x32xf32> to vector<8x8xf32>
    %64 = vector.extract_strided_slice %9 {offsets = [0, 24], sizes = [8, 8], strides = [1, 1]} : vector<8x32xf32> to vector<8x8xf32>
    %65 = vector.extract_strided_slice %11 {offsets = [0, 24], sizes = [8, 8], strides = [1, 1]} : vector<8x32xf32> to vector<8x8xf32>
    %cst_31 = arith.constant dense<0.000000e+00> : vector<8x8xf32>
    %66 = tpu.matmul %63, %64, %cst_31 {dimension_numbers = #tpu.dot_dimension_numbers<[1], [1], [0], [0], [0, 0, 1, 0], [], []>} : vector<8x8xf32>, vector<8x8xf32>, vector<8x8xf32> -> vector<8x8xf32>
    %cst_32 = arith.constant 0.353553385 : f32
    %67 = vector.broadcast %cst_32 : f32 to vector<8x8xf32>
    %68 = arith.mulf %66, %67 : vector<8x8xf32>
    %cst_33 = arith.constant dense<0xFF800000> : vector<8xf32>
    %69 = vector.multi_reduction <maximumf>, %68, %cst_33 [1] : vector<8x8xf32> to vector<8xf32>
    %70 = vector.shape_cast %69 : vector<8xf32> to vector<8x1xf32>
    %71 = vector.broadcast %70 : vector<8x1xf32> to vector<8x8xf32>
    %72 = arith.subf %68, %71 : vector<8x8xf32>
    %73 = math.exp %72 : vector<8x8xf32>
    %cst_34 = arith.constant dense<0.000000e+00> : vector<8xf32>
    %74 = vector.multi_reduction <add>, %73, %cst_34 [1] : vector<8x8xf32> to vector<8xf32>
    %75 = vector.shape_cast %74 : vector<8xf32> to vector<8x1xf32>
    %76 = tpu.reciprocal %75 : vector<8x1xf32> -> vector<8x1xf32>
    %77 = vector.broadcast %76 : vector<8x1xf32> to vector<8x8xf32>
    %78 = arith.mulf %73, %77 : vector<8x8xf32>
    %cst_35 = arith.constant dense<0.000000e+00> : vector<8x8xf32>
    %79 = tpu.matmul %78, %65, %cst_35 {dimension_numbers = #tpu.dot_dimension_numbers<[1], [0], [0], [1], [0, 0, 1, 1], [], []>} : vector<8x8xf32>, vector<8x8xf32>, vector<8x8xf32> -> vector<8x8xf32>
    %80 = tpu.concatenate %28, %45, %62, %79 in 1 : vector<8x8xf32>, vector<8x8xf32>, vector<8x8xf32>, vector<8x8xf32> -> vector<8x32xf32>
    %c0_36 = arith.constant 0 : index
    %c0_37 = arith.constant 0 : index
    %81 = vector.load %arg7[%c0_36, %c0_37] : memref<32x32xf32, #tpu.memory_space<vmem>>, vector<32x32xf32>
    %cst_38 = arith.constant dense<0.000000e+00> : vector<8x32xf32>
    %82 = tpu.matmul %80, %81, %cst_38 {dimension_numbers = #tpu.dot_dimension_numbers<[1], [0], [0], [1], [0, 0, 1, 1], [], []>} : vector<8x32xf32>, vector<32x32xf32>, vector<8x32xf32> -> vector<8x32xf32>
    %c0_39 = arith.constant 0 : index
    %c0_40 = arith.constant 0 : index
    %83 = vector.load %arg8[%c0_39, %c0_40] : memref<1x32xf32, #tpu.memory_space<vmem>>, vector<1x32xf32>
    %84 = vector.broadcast %83 : vector<1x32xf32> to vector<8x32xf32>
    %85 = arith.addf %82, %84 : vector<8x32xf32>
    %c0_41 = arith.constant 0 : index
    %c0_42 = arith.constant 0 : index
    %c0_43 = arith.constant 0 : index
    %86 = vector.load %arg9[%c0_41, %c0_42, %c0_43] : memref<1x8x32xf32, #tpu.memory_space<vmem>>, vector<1x8x32xf32>
    %87 = vector.shape_cast %86 : vector<1x8x32xf32> to vector<8x32xf32>
    %88 = vector.shape_cast %85 : vector<8x32xf32> to vector<1x8x32xf32>
    tpu.vector_store %arg9[%c0_41, %c0_42, %c0_43], %88 {strides = array<i32>} : memref<1x8x32xf32, #tpu.memory_space<vmem>>, vector<1x8x32xf32>,
    return
  }
  func.func @transform_0(%arg0: i32) -> (i32, i32, i32) {
    %c0_i32 = arith.constant 0 : i32
    %c0_i32_0 = arith.constant 0 : i32
    %c0_i32_1 = arith.constant 0 : i32
    return %arg0, %c0_i32, %c0_i32_0 : i32, i32, i32
  }
  func.func @transform_1(%arg0: i32) -> (i32, i32, i32) {
    %c0_i32 = arith.constant 0 : i32
    %c0_i32_0 = arith.constant 0 : i32
    %c0_i32_1 = arith.constant 0 : i32
    return %arg0, %c0_i32, %c0_i32_0 : i32, i32, i32
  }
  func.func @transform_2(%arg0: i32) -> (i32, i32, i32) {
    %c0_i32 = arith.constant 0 : i32
    %c0_i32_0 = arith.constant 0 : i32
    %c0_i32_1 = arith.constant 0 : i32
    return %arg0, %c0_i32, %c0_i32_0 : i32, i32, i32
  }
  func.func @transform_3(%arg0: i32) -> (i32, i32) {
    %c0_i32 = arith.constant 0 : i32
    %c0_i32_0 = arith.constant 0 : i32
    %c0_i32_1 = arith.constant 0 : i32
    return %c0_i32, %c0_i32_0 : i32, i32
  }
  func.func @transform_4(%arg0: i32) -> (i32, i32) {
    %c0_i32 = arith.constant 0 : i32
    %c0_i32_0 = arith.constant 0 : i32
    %c0_i32_1 = arith.constant 0 : i32
    return %c0_i32, %c0_i32_0 : i32, i32
  }
  func.func @transform_5(%arg0: i32) -> (i32, i32) {
    %c0_i32 = arith.constant 0 : i32
    %c0_i32_0 = arith.constant 0 : i32
    %c0_i32_1 = arith.constant 0 : i32
    return %c0_i32, %c0_i32_0 : i32, i32
  }
  func.func @transform_6(%arg0: i32) -> (i32, i32) {
    %c0_i32 = arith.constant 0 : i32
    %c0_i32_0 = arith.constant 0 : i32
    %c0_i32_1 = arith.constant 0 : i32
    return %c0_i32, %c0_i32_0 : i32, i32
  }
  func.func @transform_7(%arg0: i32) -> (i32, i32) {
    %c0_i32 = arith.constant 0 : i32
    %c0_i32_0 = arith.constant 0 : i32
    %c0_i32_1 = arith.constant 0 : i32
    return %c0_i32, %c0_i32_0 : i32, i32
  }
  func.func @transform_8(%arg0: i32) -> (i32, i32, i32) {
    %c0_i32 = arith.constant 0 : i32
    %c0_i32_0 = arith.constant 0 : i32
    %c0_i32_1 = arith.constant 0 : i32
    return %arg0, %c0_i32, %c0_i32_0 : i32, i32, i32
  }
}

</mosaic_0001>

<bundles_post_ra>
// kernel: multi_head_attention.1
= control target key start
LH: loop header
LB: loop body
LE: loop exit
PB: predicated region body
PF: predicated region fallthrough
CT: control target
= control target key end

     0   :  { %13 = vsyncpa [#allocation3], 0  ;;  %s2032_s0 = inlined_call_operand.vmem [shape: f32[2,8,32], index: 0, kind: input, shape index: {}]   ;;  %s2033_s1 = inlined_call_operand.vmem [shape: f32[2,8,32], index: 1, kind: input, shape index: {}]   ;;  %s2034_s2 = inlined_call_operand.vmem [shape: f32[2,8,32], index: 2, kind: input, shape index: {}]   ;;  %s2035_s3 = inlined_call_operand.vmem [shape: f32[32,32], index: 3, kind: input, shape index: {}]   ;;  %s2036_s4 = inlined_call_operand.vmem [shape: f32[32,32], index: 4, kind: input, shape index: {}]   ;;  %s2037_s5 = inlined_call_operand.vmem [shape: f32[32,32], index: 5, kind: input, shape index: {}]   ;;  %s2038_s6 = inlined_call_operand.vmem [shape: f32[32,32], index: 6, kind: input, shape index: {}]   ;;  %s2039_s7 = inlined_call_operand.vmem [shape: f32[1,32], index: 7, kind: input, shape index: {}]   ;;  %s2040_s8 = inlined_call_operand.hbm [shape: f32[2,8,32], index: 8, kind: output, shape index: {}]  }
   0x1   :  { %15 = vsyncpa [#allocation3 + $0x1], 0  ;;  %s1786_s27 = smov 0   ;;  %s1788_s28 = smov 0  }
   0x2   :  { %s1790_s29 = smov 0   ;;  %s1792_s30 = smov 0  }
   0x3 LB: > { %s1807_s9 = sadd.s32 4294967295, %s1729_s30   ;;  %s1430_s10 = sadd.s32 4294967294, %s1729_s30   ;;  %s1729_s30 = sphi %s1792_s30, %s2046_s30   ;;  %s1725_s29 = sphi %s1790_s29, %s2045_s29   ;;  %s1721_s28 = sphi %s1788_s28, %s2044_s28   ;;  %s1717_s27 = sphi %s1786_s27, %s2043_s27  }
   0x4   : > { %s1811_s11 = sadd.s32 1, %s1729_s30   ;;  %s211_s12 = sadd.s32 1, %s1725_s29 }
   0x5   : > { %s208_s13 = ssub.s32 %s1729_s30, %s1811_s11  ;;  %p221_p0 = scmp.ne.s32.totalorder %s1725_s29, %s1721_s28 }
   0x6   : > { %p209_p1 = scmp.eq.s32.totalorder %s208_s13, 0  ;;  %p222_p2 = scmp.eq.s32.totalorder %s1807_s9, 1 }
   0x7   : > { %p227_p3 = scmp.ne.s32.totalorder %s1721_s28, %s1717_s27  ;;  %p228_p4 = scmp.eq.s32.totalorder %s1430_s10, 1 }
   0x8   : > { %s1822_s14 = scalar_select %p209_p1, %s1725_s29, %s211_s12  }
   0x9   : > { %p1824_p5 = por %p222_p2, %p221_p0  ;;  %p1828_p6 = por %p228_p4, %p227_p3 }
   0xa   : > { %p1433_p7 = scmp.ge.s32.totalorder %s1729_s30, 1  ;;  %p282_p8 = scmp.lt.s32.totalorder %s1729_s30, 3 }
   0xc   : > { %p283_p9 = pnand %p1433_p7, %p282_p8 }
   0xd   : > { %v416_v0 = vld [vmem:[%s2036_s4] sm:$0xff] (!%p283_p9)  ;;  %v417_v1 = vld [vmem:[%s2036_s4 + $0x8] sm:$0xff] (!%p283_p9)  ;;  %v1731_v3 = vmov (!%p283_p9), 0.0|0.0   ;;  %v418_v6 = vld [vmem:[%s2036_s4 + $0x10] sm:$0xff] (!%p283_p9)  ;;  %p323_p10 = scmp.lt.s32.totalorder (!%p283_p9), %s1807_s9, 1  ;;  %vm1732_vm0 = vmmov (!%p283_p9), 0  }
   0xe   : > { %286 = sbr.rel (%p283_p9) target bundleno = 1922 (0x782), region = 52  ;;  %v338_v2 = vld [vmem:[%s2035_s3] sm:$0xff] (!%p283_p9)  ;;  %1585 = vmatprep.subr.bf16.mxu1 (!%p283_p9), %v1731_v3  ;;  %v1586_v4 = vpack.c.bf16 (!%p283_p9), %v417_v1, %v416_v0  ;;  %1579 = vmatprep.subr.bf16.mxu0 (!%p283_p9), %v1731_v3  ;;  %v339_v5 = vld [vmem:[%s2035_s3 + $0x8] sm:$0xff] (!%p283_p9)  ;;  %v419_v7 = vld [vmem:[%s2036_s4 + $0x18] sm:$0xff] (!%p283_p9)  ;;  %v1733_v9 = vmov (!%p283_p9), 0.0   ;;  %vm342_vm1 = vcmask (!%p283_p9), 261120  }
   0xf   : > { %v1580_v8 = vpack.c.bf16 (!%p283_p9), %v339_v5, %v338_v2  ;;  %1514 = vmatprep.mubr.msk.f32.mxu1 (!%p283_p9), %vm1732_vm0, %v1733_v9  ;;  %v340_v10 = vld [vmem:[%s2035_s3 + $0x10] sm:$0xff] (!%p283_p9)  ;;  %v341_v11 = vld [vmem:[%s2035_s3 + $0x18] sm:$0xff] (!%p283_p9)  ;;  %1503 = vmatprep.mubr.msk.f32.mxu0 (!%p283_p9), %vm1732_vm0, %v1733_v9  ;;  %v1589_v12 = vpack.c.bf16 (!%p283_p9), %v419_v7, %v418_v6  ;;  %vm570_vm2 = vcmask (!%p283_p9), 64512   ;;  %s1734_s12 = smov (!%p283_p9), 120   ;;  %s1735_s13 = smov (!%p283_p9), 112   ;;  %v493_v20 = vld [vmem:[%s2037_s5] sm:$0xff] (!%p283_p9) }
  0x10   : > { %1587 = vmatpush3.bf16.msra.mxu1 (!%p283_p9), %v1586_v4  ;;  %v1583_v13 = vpack.c.bf16 (!%p283_p9), %v341_v11, %v340_v10  ;;  %s1736_s17 = smov (!%p283_p9), 104   ;;  %v494_v21 = vld [vmem:[%s2037_s5 + $0x8] sm:$0xff] (!%p283_p9)  ;;  %v495_v22 = vld [vmem:[%s2037_s5 + $0x10] sm:$0xff] (!%p283_p9)  ;;  %v496_v24 = vld [vmem:[%s2037_s5 + $0x18] sm:$0xff] (!%p283_p9)  ;;  %s1737_s25 = smov (!%p283_p9), 8   ;;  %vm1244_vm3 = vcmask (!%p283_p9), 130048  }
  0x11   : > { %1581 = vmatpush3.bf16.msra.mxu0 (!%p283_p9), %v1580_v8  ;;  %1588 = vmatprep.subr.bf16.mxu1 (!%p283_p9), %v1731_v3  ;;  %v1592_v23 = vpack.c.bf16 (!%p283_p9), %v494_v21, %v493_v20  ;;  %v1595_v25 = vpack.c.bf16 (!%p283_p9), %v496_v24, %v495_v22  ;;  %s1738_s26 = smov (!%p283_p9), 16   ;;  %vm1246_vm4 = vcmask (!%p283_p9), 195584   ;;  %s320_s18 = sand.u32 (!%p283_p9), 1, %s1721_s28  }
  0x12   : > { %1582 = vmatprep.subr.bf16.mxu0 (!%p283_p9), %v1731_v3 }
  0x14   : > { %1590 = vmatpush3.bf16.msra.mxu1 (!%p283_p9), %v1589_v12 }
  0x15   : > { %s324_s20 = scalar_select %p323_p10, %s1807_s9, 1  ;;  %1584 = vmatpush3.bf16.msra.mxu0 %v1583_v13  ;;  %1528 = vmatprep.subr.mxu1 %v1733_v9 }
  0x16   : > { %1591 = vmatprep.subr.bf16.mxu0 %v1731_v3 }
  0x17   : > { %s1868_s21 = sshll.u32 %s324_s20, 3 }
  0x18   : > { %s330_s24 = scalar_lea.vmem %s2033_s1, %s1868_s21  ;;  %s326_s10 = scalar_lea.vmem %s2032_s0, %s1868_s21 }
  0x19   : > { %v336_v14 = vld [vmem:[%s330_s24] sm:$0xff]  ;;  %s334_s19 = scalar_lea.vmem %s2034_s2, %s1868_s21 }
  0x1a   : > { %v335_v15 = vld [vmem:[%s326_s10] sm:$0xff]  ;;  %1515 = vmatmul.mubr.msk.f32.vlgmr.msra.gmra.mrb[0].mxu1 %vm342_vm1, %v336_v14  ;;  %s1739_s10 = smov 24  }
  0x1b   : > { %1504 = vmatmul.mubr.msk.f32.vlgmr.msra.gmra.mrb[0].mxu0 %vm342_vm1, %v335_v15  ;;  %1530 = vmatprep.mubr.msk.f32.mxu1 %vm1732_vm0, %v1733_v9  ;;  %v337_v26 = vld [vmem:[%s334_s19] sm:$0xff]  ;;  %s1434_s19 = sshll.u32 %s320_s18, 3 }
  0x1c   : > { %1525 = vmatprep.mubr.msk.f32.mxu0 %vm1732_vm0, %v1733_v9  ;;  %1593 = vmatpush3.bf16.msra.mxu0 %v1592_v23 }
  0x1d   : > { %1594 = vmatprep.subr.bf16.mxu0 %v1731_v3 }
  0x20   : > { %1596 = vmatpush3.bf16.msra.mxu0 %v1595_v25 }
  0x21   : > { %1548 = vmatprep.subr.mxu0 %v1733_v9 }
  0x23   : > { %1526 = vmatmul.mubr.msk.f32.vlgmr.msra.gmra.mrb[2].mxu0 %vm342_vm1, %v337_v26  ;;  %v1248_v26 = vld [vmem:[%s2038_s6] sm:$0xff] }
  0x24   : > { %1550 = vmatprep.mubr.msk.f32.mxu0 %vm1732_vm0, %v1733_v9 }
  0xed   : > { %v489_v16 = vpop.f32.mrb[0].mxu1 }
  0xee   : > { %734 = vrot.lane.b32.xlu1 %v489_v16, %s1734_s12  ;;  %v1516_v17 = vpop.f32.mrb[1].mxu1  ;;  %1529 = vmatpush3.xpose.msk.msra.mxu1 %vm570_vm2, %v489_v16  ;;  %v412_v18 = vpop.f32.mrb[0].mxu0 }
  0xef   : > { %v1505_v19 = vpop.f32.mrb[1].mxu0  ;;  %1533 = vmatprep.subr.mxu1 %v1733_v9 }
  0xf1   : > { %1531 = vmatmul.mubr.msk.f32.vlgmr.msra.gmra.mrb[2].mxu1 %vm570_vm2, %v412_v18 }
  0xf2   : > { %732 = vrot.lane.b32.xlu1 %v412_v18, %s1734_s12  ;;  %1535 = vmatprep.mubr.msk.f32.mxu1 %vm1732_vm0, %v1733_v9 }
  0xf6   : > { %899 = vrot.lane.b32.xlu1 %v412_v18, %s1735_s13  ;;  %v1919_v36 = vpop.f32.mrb[2].mxu0 }
  0xf7   : > { %v1527_v37 = vpop.f32.mrb[3].mxu0  ;;  %1534 = vmatpush3.msra.mxu1 %v1919_v36 }
  0xf8   : > { %1538 = vmatprep.subr.mxu1 %v1733_v9 }
  0xfa   : > { %1067 = vrot.lane.b32.xlu1 %v489_v16, %s1736_s17 }
  0xfe   : > { %1065 = vrot.lane.b32.xlu1 %v412_v18, %s1736_s17 }
 0x160   : > { %v735_v38 = vpop.permute.xlu1 %734 }
 0x164   : > { %v733_v39 = vpop.permute.xlu1 %732 }
 0x168   : > { %v900_v40 = vpop.permute.xlu1 %899 }
 0x16c   : > { %v1068_v43 = vpop.permute.xlu1 %1067 }
 0x170   : > { %v1066_v45 = vpop.permute.xlu1 %1065 }
 0x1c4   : > { %v643_v27 = vpop.f32.mrb[2].mxu1 }
 0x1c5   : > { %v647_v28 = vmul.f32 0.35355338, %v643_v27  ;;  %v1532_v29 = vpop.f32.mrb[3].mxu1  ;;  %v1249_v27 = vld [vmem:[%s2038_s6 + $0x8] sm:$0xff] }
 0x1c6   : > { %v1250_v29 = vld [vmem:[%s2038_s6 + $0x10] sm:$0xff] }
 0x1c7   : > { %v648_v30 = vsel %vm570_vm2, %v647_v28, -inf }
 0x1c8   : > { %649 = vmax.xlane.f32.xlu0 %v648_v30 }
 0x255   : > { %v650_v31 = vpop.xlane.xlu0 %649 }
 0x256   : > { %v651_v32 = vsub.f32 %v647_v28, %v650_v31  ;;  %v1598_v28 = vpack.c.bf16 %v1249_v27, %v1248_v26 }
 0x258   : > { %v652_v33 = vmul.f32 1.442695, %v651_v32 }
 0x25a   : > { %1651 = vpow2.f32 %v652_v33 }
 0x264   : > { %v1652_v34 = vpop.eup %1651 }
 0x265   : > { %v654_v35 = vsel %vm570_vm2, %v1652_v34, 0.0 }
 0x266   : > { %655 = vadd.xlane.f32.xlu0 %v654_v35 }
 0x27c   : > { %901 = vrot.lane.b32.xlu0 %v489_v16, %s1735_s13 }
 0x2f3   : > { %v656_v41 = vpop.xlane.xlu0 %655 }
 0x2f4   : > { %1653 = vrcp.f32 %v656_v41 }
 0x2f7   : > { %v902_v42 = vpop.permute.xlu0 %901 }
 0x2f8   : > { %1549 = vmatpush3.xpose.msk.msra.mxu0 %vm570_vm2, %v902_v42  ;;  %v1453_v42 = vld [vmem:[%s2039_s7] ss:$0 sm:$0xff] }
 0x2f9   : > { %1558 = vmatprep.subr.mxu0 %v1733_v9 }
 0x2fb   : > { %1551 = vmatmul.mubr.msk.f32.vlgmr.msra.gmra.mrb[4].mxu0 %vm570_vm2, %v900_v40 }
 0x2fc   : > { %1559 = vmatpush3.xpose.msk.msra.mxu0 %vm570_vm2, %v1068_v43  ;;  %1560 = vmatprep.mubr.msk.f32.mxu0 %vm1732_vm0, %v1733_v9 }
 0x2fd   : > { %1597 = vmatprep.subr.bf16.mxu0 %v1731_v3 }
 0x2fe   : > { %v1654_v44 = vpop.eup %1653 }
 0x2ff   : > { %v658_v46 = vmul.f32 %v1654_v44, %v1652_v34  ;;  %1561 = vmatmul.mubr.msk.f32.vlgmr.msra.gmra.mrb[6].mxu0 %vm570_vm2, %v1066_v45 }
 0x300   : > { %1576 = vmatprep.mubr.msk.f32.mxu0 %vm1732_vm0, %v1733_v9  ;;  %1599 = vmatpush3.bf16.msra.mxu0 %v1598_v28 }
 0x301   : > { %1536 = vmatmul.mubr.msk.f32.vlgmr.msra.gmra.mrb[4].mxu1 %vm570_vm2, %v658_v46  ;;  %1600 = vmatprep.subr.bf16.mxu0 %v1731_v3 }
 0x302   : > { %1539 = vmatpush3.xpose.msk.msra.mxu1 %vm570_vm2, %v735_v38  ;;  %1540 = vmatprep.mubr.msk.f32.mxu1 %vm1732_vm0, %v1733_v9 }
 0x303   : > { %1543 = vmatprep.subr.mxu1 %v1733_v9 }
 0x305   : > { %1541 = vmatmul.mubr.msk.f32.vlgmr.msra.gmra.mrb[6].mxu1 %vm570_vm2, %v733_v39 }
 0x306   : > { %1545 = vmatprep.mubr.msk.f32.mxu1 %vm1732_vm0, %v1733_v9 }
 0x3ce   : > { %v973_v47 = vpop.f32.mrb[4].mxu0 }
 0x3cf   : > { %v977_v48 = vmul.f32 0.35355338, %v973_v47  ;;  %v1552_v49 = vpop.f32.mrb[5].mxu0 }
 0x3d1   : > { %v978_v50 = vsel %vm570_vm2, %v977_v48, -inf }
 0x3d2   : > { %979 = vmax.xlane.f32.xlu0 %v978_v50  ;;  %v1139_v51 = vpop.f32.mrb[6].mxu0 }
 0x3d3   : > { %v1562_v52 = vpop.f32.mrb[7].mxu0  ;;  %v1143_v58 = vmul.f32 0.35355338, %v1139_v51 }
 0x3d4   : > { %v1943_v53 = vpop.f32.mrb[4].mxu1 }
 0x3d5   : > { %v1537_v54 = vpop.f32.mrb[5].mxu1  ;;  %v1144_v60 = vsel %vm570_vm2, %v1143_v58, -inf }
 0x3d8   : > { %v806_v55 = vpop.f32.mrb[6].mxu1 }
 0x3d9   : > { %v810_v56 = vmul.f32 0.35355338, %v806_v55  ;;  %v1542_v57 = vpop.f32.mrb[7].mxu1 }
 0x3db   : > { %v811_v59 = vsel %vm570_vm2, %v810_v56, -inf }
 0x3dc   : > { %812 = vmax.xlane.f32.xlu1 %v811_v59 }
 0x3e0   : > { %1145 = vmax.xlane.f32.xlu1 %v1144_v60 }
 0x45f   : > { %v980_v61 = vpop.xlane.xlu0 %979 }
 0x460   : > { %v981_v62 = vsub.f32 %v977_v48, %v980_v61 }
 0x462   : > { %v982_v63 = vmul.f32 1.442695, %v981_v62 }
 0x464   : > { %1655 = vpow2.f32 %v982_v63 }
 0x469   : > { %v813_v0 = vpop.xlane.xlu1 %812 }
 0x46a   : > { %v814_v10 = vsub.f32 %v810_v56, %v813_v0 }
 0x46c   : > { %v815_v11 = vmul.f32 1.442695, %v814_v10 }
 0x46d   : > { %v1146_v1 = vpop.xlane.xlu1 %1145 }
 0x46e   : > { %v1656_v2 = vpop.eup %1655  ;;  %v1147_v4 = vsub.f32 %v1143_v58, %v1146_v1 }
 0x46f   : > { %v984_v5 = vsel %vm570_vm2, %v1656_v2, 0.0 }
 0x470   : > { %v1148_v6 = vmul.f32 1.442695, %v1147_v4  ;;  %985 = vadd.xlane.f32.xlu0 %v984_v5 }
 0x472   : > { %1657 = vpow2.f32 %v1148_v6 }
 0x473   : > { %1659 = vpow2.f32 %v815_v11 }
 0x47c   : > { %v1658_v7 = vpop.eup %1657 }
 0x47d   : > { %v1150_v8 = vsel %vm570_vm2, %v1658_v7, 0.0  ;;  %v1660_v12 = vpop.eup %1659 }
 0x47e   : > { %1151 = vadd.xlane.f32.xlu1 %v1150_v8  ;;  %v817_v13 = vsel %vm570_vm2, %v1660_v12, 0.0 }
 0x486   : > { %823 = vrot.lane.b32.xlu0 %v1919_v36, %s1734_s12 }
 0x48f   : > { %989 = vrot.lane.b32.xlu1 %v1919_v36, %s1735_s13  ;;  %s1456_s13 = sshll.u32 %s1807_s9, 7  ;;  %s1740_s9 = smov [#allocation2]  }
 0x490   : > { %s1989_s24 = scalar_lea.hbm %s2040_s8, %s1456_s13 }
 0x4b3   : > { %818 = vadd.xlane.f32.xlu1 %v817_v13 }
 0x4c4   : > { %1155 = vrot.lane.b32.xlu1 %v1919_v36, %s1736_s17  ;;  %s322_s17 = scalar_lea.vmem [#allocation2], %s1434_s19 }
 0x4c5   : > { %s1347_s20 = sshll.u32 %s322_s17, 4  ;;  %s1991_s20 = int_to_ptr.vmem [resolvable:$true] %s1347_s20 }
 0x4fd   : > { %v986_v14 = vpop.xlane.xlu0 %985 }
 0x501   : > { %v824_v15 = vpop.permute.xlu0 %823 }
 0x502   : > { %1544 = vmatpush3.msra.mxu1 %v824_v15 }
 0x503   : > { %1553 = vmatprep.subr.mxu1 %v1733_v9 }
 0x50b   : > { %v1152_v16 = vpop.xlane.xlu1 %1151 }
 0x50f   : > { %v990_v17 = vpop.permute.xlu1 %989 }
 0x540   : > { %v819_v18 = vpop.xlane.xlu1 %818 }
 0x541   : > { %1661 = vrcp.f32 %v819_v18 }
 0x542   : > { %1663 = vrcp.f32 %v986_v14 }
 0x543   : > { %1665 = vrcp.f32 %v1152_v16 }
 0x544   : > { %v1156_v24 = vpop.permute.xlu1 %1155 }
 0x54b   : > { %v1662_v19 = vpop.eup %1661 }
 0x54c   : > { %v821_v20 = vmul.f32 %v1662_v19, %v1660_v12  ;;  %v1664_v21 = vpop.eup %1663 }
 0x54d   : > { %v988_v22 = vmul.f32 %v1664_v21, %v1656_v2  ;;  %v1666_v23 = vpop.eup %1665 }
 0x54e   : > { %1546 = vmatmul.mubr.msk.f32.vlgmr.msra.gmra.mrb[8].mxu1 %vm570_vm2, %v821_v20  ;;  %v1154_v25 = vmul.f32 %v1666_v23, %v1658_v7 }
 0x54f   : > { %1554 = vmatpush3.msra.mxu1 %v990_v17  ;;  %1555 = vmatprep.mubr.msk.f32.mxu1 %vm1732_vm0, %v1733_v9 }
 0x550   : > { %1563 = vmatprep.subr.mxu1 %v1733_v9 }
 0x552   : > { %1556 = vmatmul.mubr.msk.f32.vlgmr.msra.gmra.mrb[10].mxu1 %vm570_vm2, %v988_v22 }
 0x553   : > { %1564 = vmatpush3.msra.mxu1 %v1156_v24  ;;  %1565 = vmatprep.mubr.msk.f32.mxu1 %vm1732_vm0, %v1733_v9  ;;  %v1251_v9 = vld [vmem:[%s2038_s6 + $0x18] sm:$0xff] }
 0x554   : > { %v1601_v30 = vpack.c.bf16 %v1251_v9, %v1250_v29 }
 0x556   : > { %1566 = vmatmul.mubr.msk.f32.vlgmr.msra.gmra.mrb[12].mxu1 %vm570_vm2, %v1154_v25  ;;  %1602 = vmatpush3.bf16.msra.mxu0 %v1601_v30 }
 0x621   : > { %v895_v31 = vpop.f32.mrb[8].mxu1 }
 0x622   : > { %1232 = vrot.lane.b32.xlu0 %v895_v31, %s1737_s25  ;;  %v1547_v32 = vpop.f32.mrb[9].mxu1  ;;  %s1334_s25 = scalar_lea.sflag [#allocation3], %s320_s18 }
 0x625   : > { %v1061_v33 = vpop.f32.mrb[10].mxu1 }
 0x626   : > { %1236 = vrot.lane.b32.xlu1 %v1061_v33, %s1738_s26  ;;  %v1557_v34 = vpop.f32.mrb[11].mxu1  ;;  %s1667_s26 = scalar_lea.vmem %s1991_s20, 128 }
 0x627   : > { %p1668_p11 = scmp.ne.s32.totalorder %s1991_s20, %s1667_s26 }
 0x629   : > { %v1227_v3 = vpop.f32.mrb[12].mxu1  ;;  %p1669_p12 = pnand %p1668_p11, %p1824_p5 }
 0x62a   : > { %1240 = vrot.lane.b32.xlu0 %v1227_v3, %s1739_s10  ;;  %v1567_v35 = vpop.f32.mrb[13].mxu1  ;;  %s1671_s10 = sshll.u32 %s1740_s9, 4  ;;  %s1672_s10 = int_to_ptr.vmem [resolvable:$false] %s1671_s10 }
 0x62b   : > { %p1670_p13 = pneg %p1669_p12  ;;  %s1673_s19 = scalar_lea.vmem %s1672_s10, 256 }
 0x62c   : > { %p1674_p0 = scmp.lt.s32.totalorder %s1991_s20, %s1672_s10  ;;  %p1675_p1 = scmp.lt.s32.totalorder %s1673_s19, %s1667_s26 }
 0x62e   : > { %p1676_p2 = por %p1675_p1, %p1674_p0 }
 0x630   : > { %p1677_p3 = pnand %p1676_p2, %p1670_p13 }
 0x694   : > { %v1233_v36 = vpop.permute.xlu0 %1232 }
 0x695   : > { %v1243_v38 = vsel %vm570_vm2, %v1943_v53, %v1233_v36 }
 0x698   : > { %v1237_v37 = vpop.permute.xlu1 %1236 }
 0x699   : > { %v1245_v39 = vsel %vm1244_vm3, %v1243_v38, %v1237_v37 }
 0x69c   : > { %v1241_v40 = vpop.permute.xlu0 %1240 }
 0x69d   : > { %v1247_v41 = vsel %vm1246_vm4, %v1245_v39, %v1241_v40 }
 0x69e   : > { %1577 = vmatmul.mubr.msk.f32.vlgmr.msra.gmra.mrb[8].mxu0 %vm342_vm1, %v1247_v41 }
 0x771   : > { %v1328_v43 = vpop.f32.mrb[8].mxu0 }
 0x772   : > { %v1329_v44 = vadd.f32 %v1453_v42, %v1328_v43  ;;  %v1578_v45 = vpop.f32.mrb[9].mxu0 }
 0x774   : > { %1332 = vst.msk [vmem:[%s322_s17] sm:$0xff] %vm342_vm1, %v1329_v44 }
 0x775   : > { %1680 = shalt.err (!%p1677_p3)
}
 0x776   : > { %s1681_s18 = scalar_lea.hbm %s1989_s24, 128  ;;  %s1685_s13 = scalar_lea.hbm %s2040_s8, 256 }
 0x777   : > { %p1682_p4 = scmp.ne.s32.totalorder %s1989_s24, %s1681_s18  ;;  %p1686_p9 = scmp.lt.u32.totalorder %s1989_s24, %s2040_s8 }
 0x778   : > { %p1687_p10 = scmp.lt.u32.totalorder %s1685_s13, %s1681_s18  ;;  %p1689_p12 = scmp.lt.u32.totalorder %s1681_s18, %s1989_s24 }
 0x779   : > { %p1683_p7 = pnand %p1682_p4, %p1824_p5 }
 0x77a   : > { %p1688_p11 = por %p1687_p10, %p1686_p9 }
 0x77b   : > { %p1684_p8 = pneg %p1683_p7 }
 0x77c   : > { %p1690_p13 = por %p1689_p12, %p1688_p11 }
 0x77e   : > { %p1691_p0 = pnand %p1690_p13, %p1684_p8 }
 0x780   : > { %1694 = shalt.err (!%p1691_p0)
}
 0x781   : > { %1603 = dma.vmem_to_hbm [thread:$0]  (%p1824_p5), %s1991_s20, 128, %s1989_s24, %s1334_s25  }
 0x782 PF: > { %p1609_p1 = scmp.ge.s32.totalorder %s1729_s30, 2  ;;  %s1359_s23 = sand.u32 1, %s1717_s27  }
 0x783   : > { %s1360_s26 = scalar_lea.sflag [#allocation3], %s1359_s23 }
 0x784   : > { %p1606_p2 = pnand %p1609_p1, %p1828_p6 }
 0x786   : > { %1712 = dma.done.wait (!%p1606_p2), %s1360_s26, 128  }
 0x787   : > { %1714 = vsyncadd (!%p1606_p2), %s1360_s26, 4294967168  ;;  %p18_p3 = scmp.ge.s32.totalorder %s1811_s11, 4   ;;  %s2043_s27 = smov %s1721_s28 }
 0x788   : > { %s2044_s28 = smov %s1725_s29  ;;  %s2045_s29 = smov %s1822_s14 }
 0x789   : > { %s2046_s30 = smov %s1811_s11  ;;  %20 = sbr.rel (!%p18_p3) target bundleno = 3 (0x3), region = 93 }
 0x790   :  { %1365 = vsyncpa [#allocation3], 1 }
 0x791   :  { %1367 = vsyncpa [#allocation3 + $0x1], 1 }

</bundles_post_ra>
